<compile_context>
chip_gen: v5e
topology: v5e:2x2
jax: 0.10.0
libtpu: 0.0.40
codegen_flags: <defaults>
</compile_context>

<pallas_src>
import functools

import jax
import jax.numpy as jnp
from jax.experimental import pallas as pl
from jax.experimental.pallas import tpu as pltpu

LANE = 128


def _round_up(x, m):
    return (x + m - 1) // m * m


def _predictor_kernel(data_ref, w_ref, mask_ref, out_ref):
    # data_ref: (TM, D)  w_ref: (D, Tp)  mask_ref: (TM, 1)  out_ref: (TM, Tp)
    acc = jnp.dot(data_ref[...], w_ref[...], preferred_element_type=jnp.float32)
    acc = acc * mask_ref[...].astype(jnp.float32)  # (TM,1) broadcast over lanes
    out_ref[...] = acc.astype(out_ref.dtype)


def prepare_predictor_weight(weight):
    """One-time prep of the nn.Linear weight: (T, D) -> (D, T_pad).

    Done at parameter-init time so the transpose / lane padding is not an
    extra HBM pass on every forward call.
    """
    T, D = weight.shape
    w_t = weight.T  # (D, T)
    if T % LANE == 0:
        return w_t
    if T >= LANE // 2:
        # Lane-dense output (unmasked vst) at <=2x output-write amplification.
        return jnp.pad(w_t, ((0, 0), (0, _round_up(T, LANE) - T)))
    # Very small T: padding to 128 lanes multiplies output HBM writes by
    # 128/T, which costs more than masked stores on this mem-bound op.
    return w_t


@functools.partial(jax.jit, static_argnames=("num_types", "tm"))
def predictor_forward(data, w_prepared, non_pad_mask, *, num_types, tm=512):
    """data: (B, S, D), w_prepared: (D, T_pad), non_pad_mask: (B, S, 1)."""
    B, S, D = data.shape
    Dw, T_pad = w_prepared.shape
    assert Dw == D
    M = B * S

    # Row-tile: big enough to amortize ~0.35us/step overhead and approach the
    # HBM roofline, small enough to double-buffer comfortably on v7x.
    tm_eff = tm if M >= tm else M
    grid_m = pl.cdiv(M, tm_eff)

    data2d = data.reshape(M, D)
    mask2d = non_pad_mask.reshape(M, 1).astype(data.dtype)

    bytes_el = jnp.dtype(data.dtype).itemsize
    cost = pl.CostEstimate(
        flops=2 * M * D * T_pad,
        transcendentals=0,
        bytes_accessed=bytes_el * (M * D + D * T_pad + M + M * T_pad),
    )

    out2d = pl.pallas_call(
        _predictor_kernel,
        out_shape=jax.ShapeDtypeStruct((M, T_pad), data.dtype),
        grid_spec=pltpu.PrefetchScalarGridSpec(
            num_scalar_prefetch=0,
            grid=(grid_m,),
            in_specs=[
                pl.BlockSpec((tm_eff, D), lambda i: (i, 0)),   # data row-tile
                pl.BlockSpec((D, T_pad), lambda i: (0, 0)),    # weight, resident
                pl.BlockSpec((tm_eff, 1), lambda i: (i, 0)),   # mask row-tile
            ],
            out_specs=pl.BlockSpec((tm_eff, T_pad), lambda i: (i, 0)),
        ),
        compiler_params=pltpu.CompilerParams(
            # independent row-tiles -> shard across v7x's 2 TensorCores
            dimension_semantics=("parallel",),
        ),
        cost_estimate=cost,
    )(data2d, w_prepared, mask2d)

    if T_pad != num_types:
        out2d = out2d[:, :num_types]
    return out2d.reshape(B, S, num_types)


def xavier_normal(key, shape, dtype=jnp.float32):
    # nn.init.xavier_normal_ for a (fan_out, fan_in) Linear weight.
    fan_out, fan_in = shape
    std = (2.0 / (fan_in + fan_out)) ** 0.5
    return std * jax.random.normal(key, shape, dtype)


if __name__ == "__main__":
    key = jax.random.PRNGKey(0)
    k_data, k_w, k_len = jax.random.split(key, 3)

    batch, seq, dim, num_types = 2, 8, 32, 16

    data = jax.random.normal(k_data, (batch, seq, dim), jnp.float32)
    weight = xavier_normal(k_w, (num_types, dim))  # torch nn.Linear layout (T, D)

    # non_pad_mask: 1.0 for valid positions, 0.0 for padding — shape (B, S, 1)
    lengths = jax.random.randint(k_len, (batch,), 1, seq + 1)
    pos = jnp.arange(seq)[None, :]
    non_pad_mask = (pos < lengths[:, None]).astype(jnp.float32)[..., None]

    w_prep = prepare_predictor_weight(weight)  # one-time, not per forward call

    # Small-shape path (single row block)
    out = predictor_forward(data, w_prep, non_pad_mask, num_types=num_types)
    jax.block_until_ready(out)
    ref = jnp.einsum("bsd,td->bst", data, weight) * non_pad_mask
    assert out.shape == (batch, seq, num_types)
    assert jnp.allclose(out, ref, atol=1e-5, rtol=1e-5)

    # Tiled multi-block path (M = 4*640 = 2560 -> grid of 5 tiles of 512 rows)
    B2, S2 = 4, 640
    d2 = jax.random.normal(jax.random.PRNGKey(1), (B2, S2, dim), jnp.float32)
    m2 = jnp.ones((B2, S2, 1), jnp.float32)
    out2 = predictor_forward(d2, w_prep, m2, num_types=num_types)
    jax.block_until_ready(out2)
    ref2 = jnp.einsum("bsd,td->bst", d2, weight) * m2
    assert jnp.allclose(out2, ref2, atol=1e-5, rtol=1e-5)

    print("KERNEL_OK")
</pallas_src>

<mosaic_0001>
module attributes {stable_mosaic.version = 11 : i64} {
  func.func @_predictor_kernel(%arg0: i32, %arg1: memref<16x32xf32, #tpu.memory_space<vmem>>, %arg2: memref<32x16xf32, #tpu.memory_space<vmem>>, %arg3: memref<16x1xf32, #tpu.memory_space<vmem>>, %arg4: memref<16x16xf32, #tpu.memory_space<vmem>>) attributes {dimension_semantics = [#tpu.dimension_semantics<parallel>], iteration_bounds = array<i64: 1>, scalar_prefetch = 0 : i64, scratch_operands = 0 : i64, tpu.core_type = #tpu.core_type<tc>, window_params = [{transform_indices = @transform_0, window_bounds = array<i64: 16, 32>}, {pipeline_mode = #tpu.pipeline_mode<synchronous>, transform_indices = @transform_1, window_bounds = array<i64: 32, 16>}, {transform_indices = @transform_2, window_bounds = array<i64: 16, 1>}, {transform_indices = @transform_3, window_bounds = array<i64: 16, 16>}]} {
    %c0 = arith.constant 0 : index
    %c0_0 = arith.constant 0 : index
    %0 = vector.load %arg1[%c0, %c0_0] : memref<16x32xf32, #tpu.memory_space<vmem>>, vector<16x32xf32>
    %c0_1 = arith.constant 0 : index
    %c0_2 = arith.constant 0 : index
    %1 = vector.load %arg2[%c0_1, %c0_2] : memref<32x16xf32, #tpu.memory_space<vmem>>, vector<32x16xf32>
    %cst = arith.constant dense<0.000000e+00> : vector<16x16xf32>
    %2 = tpu.matmul %0, %1, %cst {dimension_numbers = #tpu.dot_dimension_numbers<[1], [0], [0], [1], [0, 0, 1, 1], [], []>} : vector<16x32xf32>, vector<32x16xf32>, vector<16x16xf32> -> vector<16x16xf32>
    %c0_3 = arith.constant 0 : index
    %c0_4 = arith.constant 0 : index
    %3 = vector.load %arg3[%c0_3, %c0_4] : memref<16x1xf32, #tpu.memory_space<vmem>>, vector<16x1xf32>
    %4 = vector.broadcast %3 : vector<16x1xf32> to vector<16x16xf32>
    %5 = arith.mulf %2, %4 : vector<16x16xf32>
    %c0_5 = arith.constant 0 : index
    %c0_6 = arith.constant 0 : index
    %6 = vector.load %arg4[%c0_5, %c0_6] : memref<16x16xf32, #tpu.memory_space<vmem>>, vector<16x16xf32>
    tpu.vector_store %arg4[%c0_5, %c0_6], %5 {strides = array<i32>} : memref<16x16xf32, #tpu.memory_space<vmem>>, vector<16x16xf32>,
    return
  }
  func.func @transform_0(%arg0: i32) -> (i32, i32) {
    %c0_i32 = arith.constant 0 : i32
    %c0_i32_0 = arith.constant 0 : i32
    return %arg0, %c0_i32 : i32, i32
  }
  func.func @transform_1(%arg0: i32) -> (i32, i32) {
    %c0_i32 = arith.constant 0 : i32
    %c0_i32_0 = arith.constant 0 : i32
    %c0_i32_1 = arith.constant 0 : i32
    return %c0_i32, %c0_i32_0 : i32, i32
  }
  func.func @transform_2(%arg0: i32) -> (i32, i32) {
    %c0_i32 = arith.constant 0 : i32
    %c0_i32_0 = arith.constant 0 : i32
    return %arg0, %c0_i32 : i32, i32
  }
  func.func @transform_3(%arg0: i32) -> (i32, i32) {
    %c0_i32 = arith.constant 0 : i32
    %c0_i32_0 = arith.constant 0 : i32
    return %arg0, %c0_i32 : i32, i32
  }
}

</mosaic_0001>

<bundles_post_ra>
// kernel: predictor_forward.1
= control target key start
LH: loop header
LB: loop body
LE: loop exit
PB: predicated region body
PF: predicated region fallthrough
CT: control target
= control target key end

     0   :  { %v123_v3 = vmov 0   ;;  %s174_s0 = inlined_call_operand.vmem [shape: f32[16,32], index: 0, kind: input, shape index: {}]   ;;  %s175_s1 = inlined_call_operand.vmem [shape: f32[32,16], index: 1, kind: input, shape index: {}]   ;;  %s176_s2 = inlined_call_operand.vmem [shape: f32[16,1], index: 2, kind: input, shape index: {}]   ;;  %s177_s3 = inlined_call_operand.hbm [shape: f32[16,16], index: 3, kind: output, shape index: {}]  }
   0x1   :  { %v20_v0 = vld [vmem:[%s175_s1 + $0x18] sm:$0xff]  ;;  %v51_v1 = vld [vmem:[%s176_s2] sm:$0xff]  ;;  %v19_v2 = vld [vmem:[%s175_s1 + $0x10] sm:$0xff]  ;;  %96 = vset.pattern.permute.xlu0 %v123_v3 }
   0x2   :  { %40 = vmatpush.msra.mxu0 %v20_v0  ;;  %88 = vmatpush.msra.mxu1 %v20_v0  ;;  %v18_v4 = vld [vmem:[%s175_s1 + $0x8] sm:$0xff] }
   0x3   :  { %8 = vsyncpa [#allocation3], 0  ;;  %55 = vperm.xlu0 %96, %v51_v1   ;;  %v17_v5 = vld [vmem:[%s175_s1] sm:$0xff]  ;;  %vm21_vm0 = vcmask 261120   ;;  %v16_v7 = vld [vmem:[%s174_s0 + $0x8] sm:$0xff]  ;;  %s124_s1 = smov [#allocation2]  }
   0x4   :  { %41 = vmatpush.msra.mxu0 %v19_v2  ;;  %89 = vmatpush.msra.mxu1 %v19_v2  ;;  %v15_v6 = vld [vmem:[%s174_s0] sm:$0xff]  ;;  %v52_v8 = vld [vmem:[%s176_s2 + $0x8] sm:$0xff]  ;;  %s72_s28 = sshll.u32 %s124_s1, 4  ;;  %s74_s4 = sshll.u32 %s177_s3, 4  ;;  %vm65_vm1 = vcmask 130048   ;;  %s73_s28 = int_to_ptr.vmem [resolvable:$true] %s72_s28  ;;  %s75_s4 = int_to_ptr.hbm [resolvable:$true] %s74_s4 }
   0x5   :  { %s125_s0 = smov 128   ;;  %s126_s2 = smov 8  }
   0x6   :  { %42 = vmatpush.msra.mxu0 %v18_v4  ;;  %90 = vmatpush.msra.mxu1 %v18_v4 }
   0x8   :  { %43 = vmatpush.msra.mxu0 %v17_v5  ;;  %91 = vmatpush.msra.mxu1 %v17_v5 }
   0x9   :  { %86 = vmatmul.msk.f32.vlgmr.msra.gmra.mxu0 %vm21_vm0, %v15_v6  ;;  %87 = vmatmul.msk.f32.vlgmr.msra.gmra.mxu1 %vm21_vm0, %v16_v7 }
   0xb   :  { %60 = vperm.xlu0 %96, %v52_v8  }
  0x75   :  { %v56_v9 = vpop.permute.xlu0 %55 }
  0x7d   :  { %v61_v11 = vpop.permute.xlu0 %60 }
  0x86   :  { %v45_v10 = vpop.f32.mrf.mxu0  ;;  %v48_v13 = vpop.f32.mrf.mxu1 }
  0x87   :  { %v63_v12 = vmul.f32 %v56_v9, %v45_v10  ;;  %v64_v14 = vmul.f32 %v61_v11, %v48_v13 }
  0x89   :  { %66 = vst.msk [vmem:[#allocation2] sm:$0xff] %vm65_vm1, %v63_v12 }
  0x8a   :  { %67 = vst.msk [vmem:[#allocation2 + $0x8] sm:$0xff] %vm65_vm1, %v64_v14 }
  0x8b   :  { %80 = dma.vmem_to_hbm [thread:$0]  %s73_s28, 256, %s75_s4, [#allocation3], %s125_s0, %s125_s0, %s126_s2  }
  0x8c   :  { %121 = dma.done.wait [#allocation3], 256  }
  0x8d   :  { %122 = vsyncadd [#allocation3], 4294967040 }
  0x8e   :  { %85 = vsyncpa [#allocation3], 1 }

</bundles_post_ra>
